<compile_context>
chip_gen: v5e
topology: v5e:2x2
jax: 0.10.0
libtpu: 0.0.40
codegen_flags: <defaults>
</compile_context>

<pallas_src>
import functools

import jax
import jax.numpy as jnp
from jax.experimental import pallas as pl
from jax.experimental.pallas import tpu as pltpu


def _round_up(x, m):
    return ((x + m - 1) // m) * m


def swag_mlp_kernel(x_ref, w1_ref, b1_ref, w2_ref, b2_ref, out_ref):
    # Layer 1: Linear on the MXU (bf16 operands, f32 accumulation), then
    # bias add + ReLU in f32 on the VPU.
    h = jnp.dot(x_ref[...], w1_ref[...], preferred_element_type=jnp.float32)
    h = jnp.maximum(h + b1_ref[...], 0.0)                 # (1, H) broadcasts
    # Layer 2: Linear (re-feed activations to the MXU in bf16).
    y = jnp.dot(h.astype(w2_ref.dtype), w2_ref[...],
                preferred_element_type=jnp.float32)
    out_ref[...] = (y + b2_ref[...]).astype(out_ref.dtype)


def prepare_swag_params(w1, b1, w2, b2):
    """One-time layout/dtype prep of the base-MLP parameters.

    PyTorch nn.Linear stores weights as (out, in); the MXU wants (in, out).
    Do the transpose + bf16 cast ONCE and cache the result (SWAG only swaps
    parameters when sample()/collect_model() runs), so the per-forward hot
    path launches no extra transpose/cast/pad ops.
    """
    w1_t = jnp.asarray(w1).T.astype(jnp.bfloat16)              # (Din, H)
    b1_r = jnp.asarray(b1).reshape(1, -1).astype(jnp.float32)  # (1, H)
    w2_t = jnp.asarray(w2).T.astype(jnp.bfloat16)              # (H, Dout)
    b2_r = jnp.asarray(b2).reshape(1, -1).astype(jnp.float32)  # (1, Dout)
    return w1_t, b1_r, w2_t, b2_r


def _default_tile_b(batch):
    """Per-generation-friendly batch tile: 1 step for tiny batches (grid
    bookkeeping dominates on single-TC v5e/v6e), otherwise a short 2-8 step
    grid so dual-TC v7x can split the parallel axis without many tiny steps.
    Tiles stay far below any generation's scoped-VMEM budget."""
    b_r = _round_up(batch, 8)
    if b_r <= 256:
        return b_r
    steps = min(max(2, pl.cdiv(b_r, 2048)), 8)
    return _round_up(pl.cdiv(b_r, steps), 8)


@functools.partial(jax.jit, static_argnames=("tile_b",))
def swag_model_forward(x, w1_t, b1_r, w2_t, b2_r, tile_b=None):
    """Forward of the SWAG-wrapped base MLP.

    x    : (B, Din)   float32
    w1_t : (Din, H)   bfloat16   (from prepare_swag_params)
    b1_r : (1, H)     float32
    w2_t : (H, Dout)  bfloat16
    b2_r : (1, Dout)  float32
    returns (B, Dout) float32
    """
    B, Din = x.shape
    H = w1_t.shape[1]
    Dout = w2_t.shape[1]

    if tile_b is None:
        tile_b = _default_tile_b(B)

    b_p = _round_up(B, tile_b)
    x_bf = x.astype(jnp.bfloat16)
    if b_p != B:
        # Pad only when the batch is ragged. Padded rows compute
        # relu(b1) @ W2 + b2 (garbage) and are sliced off below; the padded
        # buffer must never be consumed directly.
        x_bf = jnp.zeros((b_p, Din), jnp.bfloat16).at[:B].set(x_bf)

    grid = (b_p // tile_b,)

    # Scheduler hint only (counts the padded batch, logical feature dims).
    cost = pl.CostEstimate(
        flops=2 * b_p * (Din * H + H * Dout),
        transcendentals=0,
        bytes_accessed=(b_p * Din * 2 + Din * H * 2 + H * Dout * 2
                        + H * 4 + Dout * 4 + b_p * Dout * 4),
    )

    out = pl.pallas_call(
        swag_mlp_kernel,
        out_shape=jax.ShapeDtypeStruct((b_p, Dout), jnp.float32),
        grid_spec=pltpu.PrefetchScalarGridSpec(
            num_scalar_prefetch=0,
            grid=grid,
            in_specs=[
                pl.BlockSpec((tile_b, Din), lambda i: (i, 0)),  # x tile, pipelined
                pl.BlockSpec((Din, H), lambda i: (0, 0)),       # W1 resident
                pl.BlockSpec((1, H), lambda i: (0, 0)),         # b1 resident
                pl.BlockSpec((H, Dout), lambda i: (0, 0)),      # W2 resident
                pl.BlockSpec((1, Dout), lambda i: (0, 0)),      # b2 resident
            ],
            out_specs=pl.BlockSpec((tile_b, Dout), lambda i: (i, 0)),
        ),
        compiler_params=pltpu.CompilerParams(
            dimension_semantics=("parallel",),
        ),
        cost_estimate=cost,
    )(x_bf, w1_t, b1_r, w2_t, b2_r)

    # No trailing slice on the aligned (common) path.
    return out if b_p == B else out[:B]


if __name__ == "__main__":
    # Deterministic synthetic setup; feature sizes match the small MLP
    # regressor SWAG wraps, batch chosen so the default grid has 2 steps.
    B, D_IN, HIDDEN, D_OUT = 512, 32, 128, 8

    key = jax.random.PRNGKey(0)
    kx, kw1, kb1, kw2, kb2 = jax.random.split(key, 5)

    x = jax.random.normal(kx, (B, D_IN), dtype=jnp.float32)

    # Parameters in PyTorch nn.Linear layout (out, in).
    w1 = jax.random.normal(kw1, (HIDDEN, D_IN), dtype=jnp.float32) * 0.1
    b1 = jax.random.normal(kb1, (HIDDEN,), dtype=jnp.float32) * 0.1
    w2 = jax.random.normal(kw2, (D_OUT, HIDDEN), dtype=jnp.float32) * 0.1
    b2 = jax.random.normal(kb2, (D_OUT,), dtype=jnp.float32) * 0.1

    # One-time parameter prep, hoisted out of the forward and reused.
    params = prepare_swag_params(w1, b1, w2, b2)

    out = swag_model_forward(x, *params)
    out = jax.block_until_ready(out)
    assert out.shape == (B, D_OUT)

    # Reference with matching bf16 rounding of the MXU operands (accumulation
    # in f32), so the check verifies kernel semantics, not just tolerance slack.
    def bf16(a):
        return a.astype(jnp.bfloat16).astype(jnp.float32)

    h_ref = jnp.maximum(bf16(x) @ bf16(w1).T + b1, 0.0)
    ref = bf16(h_ref) @ bf16(w2).T + b2
    assert jnp.allclose(out, ref, atol=1e-2, rtol=1e-2), (
        float(jnp.max(jnp.abs(out - ref))))

    # Also exercise the ragged-batch (padded) path once.
    out_small = jax.block_until_ready(swag_model_forward(x[:100], *params))
    assert out_small.shape == (100, D_OUT)
    assert jnp.allclose(out_small, ref[:100], atol=1e-2, rtol=1e-2), (
        float(jnp.max(jnp.abs(out_small - ref[:100]))))

    # TODO(synk): SWAG's sample()/collect_model()/log-likelihood posterior
    # bookkeeping is host/training-time logic, not part of the forward hot
    # path.  For multi-sample SWAG inference, add a leading 'samples' grid
    # axis (weights indexed by s and pipelined, x resident via a constant
    # index_map) to amortize launch overhead across posterior samples.
    print("KERNEL_OK")
</pallas_src>

<mosaic_0001>
module attributes {stable_mosaic.version = 11 : i64} {
  func.func @swag_mlp_kernel(%arg0: i32, %arg1: memref<256x32xbf16, #tpu.memory_space<vmem>>, %arg2: memref<32x128xbf16, #tpu.memory_space<vmem>>, %arg3: memref<1x128xf32, #tpu.memory_space<vmem>>, %arg4: memref<128x8xbf16, #tpu.memory_space<vmem>>, %arg5: memref<1x8xf32, #tpu.memory_space<vmem>>, %arg6: memref<256x8xf32, #tpu.memory_space<vmem>>) attributes {dimension_semantics = [#tpu.dimension_semantics<parallel>], iteration_bounds = array<i64: 2>, scalar_prefetch = 0 : i64, scratch_operands = 0 : i64, tpu.core_type = #tpu.core_type<tc>, window_params = [{transform_indices = @transform_0, window_bounds = array<i64: 256, 32>}, {pipeline_mode = #tpu.pipeline_mode<synchronous>, transform_indices = @transform_1, window_bounds = array<i64: 32, 128>}, {pipeline_mode = #tpu.pipeline_mode<synchronous>, transform_indices = @transform_2, window_bounds = array<i64: 1, 128>}, {pipeline_mode = #tpu.pipeline_mode<synchronous>, transform_indices = @transform_3, window_bounds = array<i64: 128, 8>}, {pipeline_mode = #tpu.pipeline_mode<synchronous>, transform_indices = @transform_4, window_bounds = array<i64: 1, 8>}, {transform_indices = @transform_5, window_bounds = array<i64: 256, 8>}]} {
    %c0 = arith.constant 0 : index
    %c0_0 = arith.constant 0 : index
    %0 = vector.load %arg1[%c0, %c0_0] : memref<256x32xbf16, #tpu.memory_space<vmem>>, vector<256x32xbf16>
    %c0_1 = arith.constant 0 : index
    %c0_2 = arith.constant 0 : index
    %1 = vector.load %arg2[%c0_1, %c0_2] : memref<32x128xbf16, #tpu.memory_space<vmem>>, vector<32x128xbf16>
    %cst = arith.constant dense<0.000000e+00> : vector<256x128xf32>
    %2 = tpu.matmul %0, %1, %cst {dimension_numbers = #tpu.dot_dimension_numbers<[1], [0], [0], [1], [0, 0, 1, 1], [], []>} : vector<256x32xbf16>, vector<32x128xbf16>, vector<256x128xf32> -> vector<256x128xf32>
    %c0_3 = arith.constant 0 : index
    %c0_4 = arith.constant 0 : index
    %3 = vector.load %arg3[%c0_3, %c0_4] : memref<1x128xf32, #tpu.memory_space<vmem>>, vector<1x128xf32>
    %4 = vector.broadcast %3 : vector<1x128xf32> to vector<256x128xf32>
    %5 = arith.addf %2, %4 : vector<256x128xf32>
    %cst_5 = arith.constant 0.000000e+00 : f32
    %6 = vector.broadcast %cst_5 : f32 to vector<256x128xf32>
    %7 = arith.maximumf %5, %6 : vector<256x128xf32>
    %8 = arith.truncf %7 : vector<256x128xf32> to vector<256x128xbf16>
    %c0_6 = arith.constant 0 : index
    %c0_7 = arith.constant 0 : index
    %9 = vector.load %arg4[%c0_6, %c0_7] : memref<128x8xbf16, #tpu.memory_space<vmem>>, vector<128x8xbf16>
    %cst_8 = arith.constant dense<0.000000e+00> : vector<256x8xf32>
    %10 = tpu.matmul %8, %9, %cst_8 {dimension_numbers = #tpu.dot_dimension_numbers<[1], [0], [0], [1], [0, 0, 1, 1], [], []>} : vector<256x128xbf16>, vector<128x8xbf16>, vector<256x8xf32> -> vector<256x8xf32>
    %c0_9 = arith.constant 0 : index
    %c0_10 = arith.constant 0 : index
    %11 = vector.load %arg5[%c0_9, %c0_10] : memref<1x8xf32, #tpu.memory_space<vmem>>, vector<1x8xf32>
    %12 = vector.broadcast %11 : vector<1x8xf32> to vector<256x8xf32>
    %13 = arith.addf %10, %12 : vector<256x8xf32>
    %c0_11 = arith.constant 0 : index
    %c0_12 = arith.constant 0 : index
    %14 = vector.load %arg6[%c0_11, %c0_12] : memref<256x8xf32, #tpu.memory_space<vmem>>, vector<256x8xf32>
    tpu.vector_store %arg6[%c0_11, %c0_12], %13 {strides = array<i32>} : memref<256x8xf32, #tpu.memory_space<vmem>>, vector<256x8xf32>,
    return
  }
  func.func @transform_0(%arg0: i32) -> (i32, i32) {
    %c0_i32 = arith.constant 0 : i32
    %c0_i32_0 = arith.constant 0 : i32
    return %arg0, %c0_i32 : i32, i32
  }
  func.func @transform_1(%arg0: i32) -> (i32, i32) {
    %c0_i32 = arith.constant 0 : i32
    %c0_i32_0 = arith.constant 0 : i32
    %c0_i32_1 = arith.constant 0 : i32
    return %c0_i32, %c0_i32_0 : i32, i32
  }
  func.func @transform_2(%arg0: i32) -> (i32, i32) {
    %c0_i32 = arith.constant 0 : i32
    %c0_i32_0 = arith.constant 0 : i32
    %c0_i32_1 = arith.constant 0 : i32
    return %c0_i32, %c0_i32_0 : i32, i32
  }
  func.func @transform_3(%arg0: i32) -> (i32, i32) {
    %c0_i32 = arith.constant 0 : i32
    %c0_i32_0 = arith.constant 0 : i32
    %c0_i32_1 = arith.constant 0 : i32
    return %c0_i32, %c0_i32_0 : i32, i32
  }
  func.func @transform_4(%arg0: i32) -> (i32, i32) {
    %c0_i32 = arith.constant 0 : i32
    %c0_i32_0 = arith.constant 0 : i32
    %c0_i32_1 = arith.constant 0 : i32
    return %c0_i32, %c0_i32_0 : i32, i32
  }
  func.func @transform_5(%arg0: i32) -> (i32, i32) {
    %c0_i32 = arith.constant 0 : i32
    %c0_i32_0 = arith.constant 0 : i32
    return %arg0, %c0_i32 : i32, i32
  }
}

</mosaic_0001>

<bundles_post_ra>
// kernel: swag_model_forward.1
= control target key start
LH: loop header
LB: loop body
LE: loop exit
PB: predicated region body
PF: predicated region fallthrough
CT: control target
= control target key end

     0   :  { %s1008_s18 = smov 0   ;;  %s1233_s0 = inlined_call_operand.vmem [shape: bf16[512,32], index: 0, kind: input, shape index: {}]   ;;  %s1234_s1 = inlined_call_operand.vmem [shape: bf16[32,128], index: 1, kind: input, shape index: {}]   ;;  %s1235_s2 = inlined_call_operand.vmem [shape: f32[1,128], index: 2, kind: input, shape index: {}]   ;;  %s1236_s3 = inlined_call_operand.vmem [shape: bf16[128,8], index: 3, kind: input, shape index: {}]   ;;  %s1237_s4 = inlined_call_operand.vmem [shape: f32[1,8], index: 4, kind: input, shape index: {}]   ;;  %s1238_s5 = inlined_call_operand.vmem [shape: f32[512,8], index: 5, kind: output, shape index: {}]  }
   0x1 LB: > { %s793_s19 = sadd.s32 4294967295, %s976_s18   ;;  %p797_p0 = scmp.ge.s32.totalorder %s976_s18, 1  ;;  %s976_s18 = sphi %s1008_s18, %s15_s18  }
   0x2   : > { %p188_p1 = scmp.lt.s32.totalorder %s976_s18, 3 }
   0x4   : > { %p189_p2 = pnand %p797_p0, %p188_p1 }
   0x5   : > { %s798_s22 = sshll.u32 (!%p189_p2), %s793_s19, 5 }
   0x6   : > { %192 = sbr.rel (%p189_p2) target bundleno = 542 (0x21e), region = 40  ;;  %p217_p3 = scmp.lt.s32.totalorder (!%p189_p2), %s798_s22, 63 }
   0xb   : > { %v941_v0 = vld [vmem:[%s1234_s1 + $0x8] sm:$0xff]  ;;  %v940_v1 = vld [vmem:[%s1234_s1] sm:$0xff]  ;;  %s1240_s22 = smov (!%p217_p3, %s798_s22), 63  ;;  %vm361_vm0 = vcmask 261120   ;;  %v949_v7 = vld [vmem:[%s1236_s3 + $0x38] sm:$0xff]  ;;  %vm704_vm1 = vcmask 64512  }
   0xc   : > { %416 = vmatpush.bf16.msra.mxu0 %v941_v0  ;;  %950 = vmatpush.bf16.msra.mxu3 %v941_v0  ;;  %s799_s25 = sshll.u32 %s1240_s22, 2  ;;  %v948_v9 = vld [vmem:[%s1236_s3 + $0x30] sm:$0xff]  ;;  %v947_v10 = vld [vmem:[%s1236_s3 + $0x28] sm:$0xff]  ;;  %v946_v11 = vld [vmem:[%s1236_s3 + $0x20] sm:$0xff]  ;;  %s801_s24 = sshll.u32 %s1240_s22, 3 }
   0xd   : > { %s1028_s28 = scalar_lea.vmem %s1233_s0, %s799_s25  ;;  %615 = vmatpush.bf16.msra.mxu1 %v949_v7  ;;  %952 = vmatpush.bf16.msra.mxu2 %v949_v7  ;;  %v945_v12 = vld [vmem:[%s1236_s3 + $0x18] sm:$0xff]  ;;  %v944_v14 = vld [vmem:[%s1236_s3 + $0x10] sm:$0xff]  ;;  %v943_v16 = vld [vmem:[%s1236_s3 + $0x8] sm:$0xff]  ;;  %s1118_s29 = scalar_lea.vmem %s1238_s5, %s801_s24 }
   0xe   : > { %v924_v2 = vld [vmem:[%s1028_s28] sm:$0xff]  ;;  %v925_v3 = vld [vmem:[%s1028_s28 + $0x8] sm:$0xff]  ;;  %v926_v4 = vld [vmem:[%s1028_s28 + $0x10] sm:$0xff] }
   0xf   : > { %v927_v5 = vld [vmem:[%s1028_s28 + $0x18] sm:$0xff]  ;;  %v928_v6 = vld [vmem:[%s1028_s28 + $0x20] sm:$0xff]  ;;  %v929_v8 = vld [vmem:[%s1028_s28 + $0x28] sm:$0xff] }
  0x10   : > { %417 = vmatpush.bf16.msra.mxu0 %v940_v1  ;;  %951 = vmatpush.bf16.msra.mxu3 %v940_v1  ;;  %v930_v13 = vld [vmem:[%s1028_s28 + $0x30] sm:$0xff]  ;;  %v933_v15 = vld [vmem:[%s1028_s28 + $0x48] sm:$0xff]  ;;  %v942_v17 = vld [vmem:[%s1236_s3] sm:$0xff] }
  0x11   : > { %616 = vmatpush.bf16.msra.mxu1 %v948_v9  ;;  %953 = vmatpush.bf16.msra.mxu2 %v948_v9  ;;  %v931_v18 = vld [vmem:[%s1028_s28 + $0x38] sm:$0xff]  ;;  %v934_v19 = vld [vmem:[%s1028_s28 + $0x50] sm:$0xff]  ;;  %v932_v20 = vld [vmem:[%s1028_s28 + $0x40] sm:$0xff] }
  0x12   : > { %v1078_v22 = vld [vmem:[%s1235_s2] ss:$0 sm:$0xff]  ;;  %v935_v23 = vld [vmem:[%s1028_s28 + $0x58] sm:$0xff]  ;;  %v937_v39 = vld [vmem:[%s1028_s28 + $0x68] sm:$0xff] }
  0x13   : > { %874 = vmatmul.msk.bf16.vlgmr.msra.gmra.mxu0 %vm361_vm0, %v924_v2  ;;  %883 = vmatmul.msk.bf16.vlgmr.msra.gmra.mxu3 %vm361_vm0, %v933_v15  ;;  %v936_v31 = vld [vmem:[%s1028_s28 + $0x60] sm:$0xff]  ;;  %v938_v47 = vld [vmem:[%s1028_s28 + $0x70] sm:$0xff]  ;;  %v939_v55 = vld [vmem:[%s1028_s28 + $0x78] sm:$0xff] }
  0x15   : > { %617 = vmatpush.bf16.msra.mxu1 %v947_v10  ;;  %954 = vmatpush.bf16.msra.mxu2 %v947_v10 }
  0x19   : > { %618 = vmatpush.bf16.msra.mxu1 %v946_v11  ;;  %955 = vmatpush.bf16.msra.mxu2 %v946_v11 }
  0x1d   : > { %619 = vmatpush.bf16.msra.mxu1 %v945_v12  ;;  %956 = vmatpush.bf16.msra.mxu2 %v945_v12 }
  0x21   : > { %620 = vmatpush.bf16.msra.mxu1 %v944_v14  ;;  %957 = vmatpush.bf16.msra.mxu2 %v944_v14 }
  0x23   : > { %875 = vmatmul.msk.bf16.gmra.mxu0 %vm361_vm0, %v925_v3  ;;  %884 = vmatmul.msk.bf16.gmra.mxu3 %vm361_vm0, %v934_v19 }
  0x25   : > { %621 = vmatpush.bf16.msra.mxu1 %v943_v16  ;;  %958 = vmatpush.bf16.msra.mxu2 %v943_v16 }
  0x29   : > { %622 = vmatpush.bf16.msra.mxu1 %v942_v17  ;;  %959 = vmatpush.bf16.msra.mxu2 %v942_v17 }
  0x33   : > { %876 = vmatmul.msk.bf16.gmra.mxu0 %vm361_vm0, %v926_v4  ;;  %885 = vmatmul.msk.bf16.gmra.mxu3 %vm361_vm0, %v935_v23 }
  0x43   : > { %877 = vmatmul.msk.bf16.gmra.mxu0 %vm361_vm0, %v927_v5  ;;  %886 = vmatmul.msk.bf16.gmra.mxu3 %vm361_vm0, %v936_v31 }
  0x53   : > { %878 = vmatmul.msk.bf16.gmra.mxu0 %vm361_vm0, %v928_v6  ;;  %887 = vmatmul.msk.bf16.gmra.mxu3 %vm361_vm0, %v937_v39 }
  0x63   : > { %879 = vmatmul.msk.bf16.gmra.mxu0 %vm361_vm0, %v929_v8  ;;  %888 = vmatmul.msk.bf16.gmra.mxu3 %vm361_vm0, %v938_v47 }
  0x73   : > { %880 = vmatmul.msk.bf16.gmra.mxu0 %vm361_vm0, %v930_v13  ;;  %889 = vmatmul.msk.bf16.gmra.mxu3 %vm361_vm0, %v939_v55 }
  0x83   : > { %881 = vmatmul.msk.bf16.gmra.mxu0 %vm361_vm0, %v931_v18 }
  0x90   : > { %v419_v21 = vpop.f32.mrf.mxu0 }
  0x91   : > { %v420_v24 = vadd.f32 %v1078_v22, %v419_v21 }
  0x93   : > { %882 = vmatmul.msk.bf16.gmra.mxu0 %vm361_vm0, %v932_v20  ;;  %v499_v27 = vmax.f32 %v420_v24, 0.0 }
  0x96   : > { %v464_v13 = vpop.f32.mrf.mxu3 }
  0x98   : > { %v421_v25 = vpop.f32.mrf.mxu0 }
  0x99   : > { %v422_v26 = vadd.f32 %v1078_v22, %v421_v25 }
  0x9b   : > { %v500_v28 = vmax.f32 %v422_v26, 0.0 }
  0x9d   : > { %v531_v29 = vpack.c.bf16 %v500_v28, %v499_v27  ;;  %v1113_v27 = vld [vmem:[%s1237_s4] ss:$0 sm:$0xff] }
  0x9e   : > { %v466_v17 = vpop.f32.mrf.mxu3 }
  0x9f   : > { %623 = vmatmul.bf16.vlgmr.msra.gmra.mxu1 %v531_v29 }
  0xa0   : > { %v424_v30 = vpop.f32.mrf.mxu0 }
  0xa1   : > { %v425_v32 = vadd.f32 %v1078_v22, %v424_v30 }
  0xa3   : > { %v501_v35 = vmax.f32 %v425_v32, 0.0 }
  0xa6   : > { %v469_v23 = vpop.f32.mrf.mxu3 }
  0xa8   : > { %v426_v33 = vpop.f32.mrf.mxu0 }
  0xa9   : > { %v427_v34 = vadd.f32 %v1078_v22, %v426_v33 }
  0xab   : > { %v502_v36 = vmax.f32 %v427_v34, 0.0 }
  0xad   : > { %v532_v37 = vpack.c.bf16 %v502_v36, %v501_v35  ;;  %v465_v35 = vadd.f32 %v1078_v22, %v464_v13  ;;  %v467_v36 = vadd.f32 %v1078_v22, %v466_v17 }
  0xae   : > { %v471_v33 = vpop.f32.mrf.mxu3 }
  0xaf   : > { %628 = vmatmul.bf16.gmra.mxu1 %v532_v37  ;;  %v517_v39 = vmax.f32 %v465_v35, 0.0  ;;  %v472_v47 = vadd.f32 %v1078_v22, %v471_v33 }
  0xb0   : > { %v429_v38 = vpop.f32.mrf.mxu0 }
  0xb1   : > { %v430_v40 = vadd.f32 %v1078_v22, %v429_v38 }
  0xb3   : > { %v503_v43 = vmax.f32 %v430_v40, 0.0  ;;  %v518_v40 = vmax.f32 %v467_v36, 0.0 }
  0xb6   : > { %v474_v38 = vpop.f32.mrf.mxu3 }
  0xb8   : > { %v431_v41 = vpop.f32.mrf.mxu0 }
  0xb9   : > { %v432_v42 = vadd.f32 %v1078_v22, %v431_v41 }
  0xbb   : > { %v504_v44 = vmax.f32 %v432_v42, 0.0 }
  0xbd   : > { %v533_v45 = vpack.c.bf16 %v504_v44, %v503_v43  ;;  %v540_v43 = vpack.c.bf16 %v518_v40, %v517_v39 }
  0xbe   : > { %v476_v44 = vpop.f32.mrf.mxu3 }
  0xbf   : > { %633 = vmatmul.bf16.gmra.mxu1 %v533_v45 }
  0xc0   : > { %v434_v46 = vpop.f32.mrf.mxu0 }
  0xc1   : > { %v435_v48 = vadd.f32 %v1078_v22, %v434_v46  ;;  %v470_v46 = vadd.f32 %v1078_v22, %v469_v23 }
  0xc3   : > { %v505_v51 = vmax.f32 %v435_v48, 0.0 }
  0xc8   : > { %v436_v49 = vpop.f32.mrf.mxu0 }
  0xc9   : > { %v437_v50 = vadd.f32 %v1078_v22, %v436_v49  ;;  %v519_v49 = vmax.f32 %v470_v46, 0.0 }
  0xcb   : > { %v506_v52 = vmax.f32 %v437_v50, 0.0  ;;  %v520_v50 = vmax.f32 %v472_v47, 0.0 }
  0xcd   : > { %v534_v53 = vpack.c.bf16 %v506_v52, %v505_v51  ;;  %v479_v52 = vpop.f32.mrf.mxu3 }
  0xcf   : > { %638 = vmatmul.bf16.gmra.mxu1 %v534_v53 }
  0xd0   : > { %v439_v54 = vpop.f32.mrf.mxu0 }
  0xd1   : > { %v440_v56 = vadd.f32 %v1078_v22, %v439_v54  ;;  %v541_v54 = vpack.c.bf16 %v520_v50, %v519_v49 }
  0xd3   : > { %v507_v59 = vmax.f32 %v440_v56, 0.0  ;;  %v475_v56 = vadd.f32 %v1078_v22, %v474_v38 }
  0xd8   : > { %v441_v57 = vpop.f32.mrf.mxu0 }
  0xd9   : > { %v442_v58 = vadd.f32 %v1078_v22, %v441_v57  ;;  %v477_v57 = vadd.f32 %v1078_v22, %v476_v44 }
  0xdb   : > { %v508_v60 = vmax.f32 %v442_v58, 0.0 }
  0xdd   : > { %v535_v61 = vpack.c.bf16 %v508_v60, %v507_v59  ;;  %v481_v59 = vpop.f32.mrf.mxu3  ;;  %v521_v60 = vmax.f32 %v475_v56, 0.0 }
  0xdf   : > { %643 = vmatmul.bf16.gmra.mxu1 %v535_v61  ;;  %v522_v61 = vmax.f32 %v477_v57, 0.0 }
  0xe0   : > { %v444_v62 = vpop.f32.mrf.mxu0 }
  0xe1   : > { %v445_v63 = vadd.f32 %v1078_v22, %v444_v62 }
  0xe3   : > { %v509_v2 = vmax.f32 %v445_v63, 0.0 }
  0xe8   : > { %v446_v0 = vpop.f32.mrf.mxu0 }
  0xe9   : > { %v447_v1 = vadd.f32 %v1078_v22, %v446_v0  ;;  %v542_v0 = vpack.c.bf16 %v522_v61, %v521_v60 }
  0xeb   : > { %v510_v3 = vmax.f32 %v447_v1, 0.0  ;;  %v484_v1 = vpop.f32.mrf.mxu3 }
  0xed   : > { %v536_v4 = vpack.c.bf16 %v510_v3, %v509_v2  ;;  %v480_v3 = vadd.f32 %v1078_v22, %v479_v52 }
  0xef   : > { %648 = vmatmul.bf16.gmra.mxu1 %v536_v4  ;;  %v482_v4 = vadd.f32 %v1078_v22, %v481_v59 }
  0xf0   : > { %v449_v5 = vpop.f32.mrf.mxu0 }
  0xf1   : > { %v450_v6 = vadd.f32 %v1078_v22, %v449_v5 }
  0xf3   : > { %v511_v9 = vmax.f32 %v450_v6, 0.0  ;;  %v523_v6 = vmax.f32 %v480_v3, 0.0 }
  0xf8   : > { %v451_v7 = vpop.f32.mrf.mxu0 }
  0xf9   : > { %v452_v8 = vadd.f32 %v1078_v22, %v451_v7  ;;  %v524_v7 = vmax.f32 %v482_v4, 0.0 }
  0xfb   : > { %v512_v10 = vmax.f32 %v452_v8, 0.0  ;;  %v486_v8 = vpop.f32.mrf.mxu3 }
  0xfd   : > { %v537_v11 = vpack.c.bf16 %v512_v10, %v511_v9 }
  0xff   : > { %653 = vmatmul.bf16.gmra.mxu1 %v537_v11  ;;  %v543_v11 = vpack.c.bf16 %v524_v7, %v523_v6 }
 0x100   : > { %v454_v12 = vpop.f32.mrf.mxu0 }
 0x101   : > { %v455_v14 = vadd.f32 %v1078_v22, %v454_v12 }
 0x103   : > { %v513_v18 = vmax.f32 %v455_v14, 0.0  ;;  %v489_v13 = vpop.f32.mrf.mxu3  ;;  %v485_v14 = vadd.f32 %v1078_v22, %v484_v1 }
 0x105   : > { %v525_v17 = vmax.f32 %v485_v14, 0.0 }
 0x108   : > { %v456_v15 = vpop.f32.mrf.mxu0 }
 0x109   : > { %v457_v16 = vadd.f32 %v1078_v22, %v456_v15  ;;  %v487_v15 = vadd.f32 %v1078_v22, %v486_v8 }
 0x10b   : > { %v514_v19 = vmax.f32 %v457_v16, 0.0  ;;  %v491_v23 = vpop.f32.mrf.mxu3 }
 0x10d   : > { %v538_v20 = vpack.c.bf16 %v514_v19, %v513_v18  ;;  %v526_v18 = vmax.f32 %v487_v15, 0.0 }
 0x10f   : > { %658 = vmatmul.bf16.gmra.mxu1 %v538_v20 }
 0x110   : > { %v459_v21 = vpop.f32.mrf.mxu0 }
 0x111   : > { %v460_v24 = vadd.f32 %v1078_v22, %v459_v21  ;;  %v544_v21 = vpack.c.bf16 %v526_v18, %v525_v17 }
 0x113   : > { %v515_v28 = vmax.f32 %v460_v24, 0.0 }
 0x118   : > { %v461_v25 = vpop.f32.mrf.mxu0 }
 0x119   : > { %v462_v26 = vadd.f32 %v1078_v22, %v461_v25  ;;  %v490_v25 = vadd.f32 %v1078_v22, %v489_v13 }
 0x11b   : > { %v516_v29 = vmax.f32 %v462_v26, 0.0  ;;  %v492_v26 = vadd.f32 %v1078_v22, %v491_v23 }
 0x11c   : > { %v624_v30 = vpop.f32.mrf.mxu1 }
 0x11d   : > { %v625_v31 = vadd.f32 %v1113_v27, %v624_v30  ;;  %v539_v32 = vpack.c.bf16 %v516_v29, %v515_v28  ;;  %v494_v29 = vpop.f32.mrf.mxu3  ;;  %v527_v30 = vmax.f32 %v490_v25, 0.0 }
 0x11f   : > { %705 = vst.msk [vmem:[%s1118_s29] sm:$0xff] %vm704_vm1, %v625_v31  ;;  %663 = vmatmul.bf16.vlgmr.msra.gmra.mxu2 %v539_v32  ;;  %v528_v31 = vmax.f32 %v492_v26, 0.0 }
 0x124   : > { %v626_v34 = vpop.f32.mrf.mxu1 }
 0x125   : > { %v627_v37 = vadd.f32 %v1113_v27, %v626_v34  ;;  %v545_v34 = vpack.c.bf16 %v528_v31, %v527_v30  ;;  %v496_v35 = vpop.f32.mrf.mxu3 }
 0x126   : > { %v497_v38 = vadd.f32 %v1078_v22, %v496_v35 }
 0x127   : > { %706 = vst.msk [vmem:[%s1118_s29 + $0x8] sm:$0xff] %vm704_vm1, %v627_v37  ;;  %v495_v37 = vadd.f32 %v1078_v22, %v494_v29 }
 0x129   : > { %v529_v40 = vmax.f32 %v495_v37, 0.0 }
 0x12c   : > { %v629_v41 = vpop.f32.mrf.mxu1 }
 0x12d   : > { %v630_v42 = vadd.f32 %v1113_v27, %v629_v41  ;;  %v530_v41 = vmax.f32 %v497_v38, 0.0 }
 0x12f   : > { %707 = vst.msk [vmem:[%s1118_s29 + $0x10] sm:$0xff] %vm704_vm1, %v630_v42  ;;  %668 = vmatmul.bf16.gmra.mxu2 %v540_v43  ;;  %v546_v44 = vpack.c.bf16 %v530_v41, %v529_v40 }
 0x134   : > { %v631_v45 = vpop.f32.mrf.mxu1 }
 0x135   : > { %v632_v48 = vadd.f32 %v1113_v27, %v631_v45 }
 0x137   : > { %708 = vst.msk [vmem:[%s1118_s29 + $0x18] sm:$0xff] %vm704_vm1, %v632_v48 }
 0x13c   : > { %v634_v51 = vpop.f32.mrf.mxu1 }
 0x13d   : > { %v635_v53 = vadd.f32 %v1113_v27, %v634_v51 }
 0x13f   : > { %709 = vst.msk [vmem:[%s1118_s29 + $0x20] sm:$0xff] %vm704_vm1, %v635_v53  ;;  %673 = vmatmul.bf16.gmra.mxu2 %v541_v54 }
 0x144   : > { %v636_v55 = vpop.f32.mrf.mxu1 }
 0x145   : > { %v637_v58 = vadd.f32 %v1113_v27, %v636_v55 }
 0x147   : > { %710 = vst.msk [vmem:[%s1118_s29 + $0x28] sm:$0xff] %vm704_vm1, %v637_v58 }
 0x14c   : > { %v639_v62 = vpop.f32.mrf.mxu1 }
 0x14d   : > { %v640_v63 = vadd.f32 %v1113_v27, %v639_v62 }
 0x14f   : > { %711 = vst.msk [vmem:[%s1118_s29 + $0x30] sm:$0xff] %vm704_vm1, %v640_v63  ;;  %678 = vmatmul.bf16.gmra.mxu2 %v542_v0 }
 0x154   : > { %v641_v2 = vpop.f32.mrf.mxu1 }
 0x155   : > { %v642_v5 = vadd.f32 %v1113_v27, %v641_v2 }
 0x157   : > { %712 = vst.msk [vmem:[%s1118_s29 + $0x38] sm:$0xff] %vm704_vm1, %v642_v5 }
 0x15c   : > { %v644_v9 = vpop.f32.mrf.mxu1 }
 0x15d   : > { %v645_v10 = vadd.f32 %v1113_v27, %v644_v9 }
 0x15f   : > { %713 = vst.msk [vmem:[%s1118_s29 + $0x40] sm:$0xff] %vm704_vm1, %v645_v10  ;;  %683 = vmatmul.bf16.gmra.mxu2 %v543_v11 }
 0x164   : > { %v646_v12 = vpop.f32.mrf.mxu1 }
 0x165   : > { %v647_v16 = vadd.f32 %v1113_v27, %v646_v12 }
 0x167   : > { %714 = vst.msk [vmem:[%s1118_s29 + $0x48] sm:$0xff] %vm704_vm1, %v647_v16 }
 0x16c   : > { %v649_v19 = vpop.f32.mrf.mxu1 }
 0x16d   : > { %v650_v20 = vadd.f32 %v1113_v27, %v649_v19 }
 0x16f   : > { %715 = vst.msk [vmem:[%s1118_s29 + $0x50] sm:$0xff] %vm704_vm1, %v650_v20  ;;  %688 = vmatmul.bf16.gmra.mxu2 %v544_v21 }
 0x174   : > { %v651_v24 = vpop.f32.mrf.mxu1 }
 0x175   : > { %v652_v28 = vadd.f32 %v1113_v27, %v651_v24 }
 0x177   : > { %716 = vst.msk [vmem:[%s1118_s29 + $0x58] sm:$0xff] %vm704_vm1, %v652_v28 }
 0x17c   : > { %v654_v32 = vpop.f32.mrf.mxu1 }
 0x17d   : > { %v655_v33 = vadd.f32 %v1113_v27, %v654_v32 }
 0x17f   : > { %717 = vst.msk [vmem:[%s1118_s29 + $0x60] sm:$0xff] %vm704_vm1, %v655_v33  ;;  %693 = vmatmul.bf16.gmra.mxu2 %v545_v34 }
 0x184   : > { %v656_v36 = vpop.f32.mrf.mxu1 }
 0x185   : > { %v657_v39 = vadd.f32 %v1113_v27, %v656_v36 }
 0x187   : > { %718 = vst.msk [vmem:[%s1118_s29 + $0x68] sm:$0xff] %vm704_vm1, %v657_v39 }
 0x18c   : > { %v659_v42 = vpop.f32.mrf.mxu1 }
 0x18d   : > { %v660_v43 = vadd.f32 %v1113_v27, %v659_v42 }
 0x18f   : > { %719 = vst.msk [vmem:[%s1118_s29 + $0x70] sm:$0xff] %vm704_vm1, %v660_v43  ;;  %698 = vmatmul.bf16.gmra.mxu2 %v546_v44 }
 0x194   : > { %v661_v45 = vpop.f32.mrf.mxu1 }
 0x195   : > { %v662_v46 = vadd.f32 %v1113_v27, %v661_v45 }
 0x197   : > { %720 = vst.msk [vmem:[%s1118_s29 + $0x78] sm:$0xff] %vm704_vm1, %v662_v46 }
 0x1a2   : > { %v664_v22 = vpop.f32.mrf.mxu2 }
 0x1a3   : > { %v665_v47 = vadd.f32 %v1113_v27, %v664_v22 }
 0x1a5   : > { %721 = vst.msk [vmem:[%s1118_s29 + $0x80] sm:$0xff] %vm704_vm1, %v665_v47 }
 0x1aa   : > { %v666_v48 = vpop.f32.mrf.mxu2 }
 0x1ab   : > { %v667_v49 = vadd.f32 %v1113_v27, %v666_v48 }
 0x1ad   : > { %722 = vst.msk [vmem:[%s1118_s29 + $0x88] sm:$0xff] %vm704_vm1, %v667_v49 }
 0x1b2   : > { %v669_v50 = vpop.f32.mrf.mxu2 }
 0x1b3   : > { %v670_v51 = vadd.f32 %v1113_v27, %v669_v50 }
 0x1b5   : > { %723 = vst.msk [vmem:[%s1118_s29 + $0x90] sm:$0xff] %vm704_vm1, %v670_v51 }
 0x1ba   : > { %v671_v52 = vpop.f32.mrf.mxu2 }
 0x1bb   : > { %v672_v53 = vadd.f32 %v1113_v27, %v671_v52 }
 0x1bd   : > { %724 = vst.msk [vmem:[%s1118_s29 + $0x98] sm:$0xff] %vm704_vm1, %v672_v53 }
 0x1c2   : > { %v674_v54 = vpop.f32.mrf.mxu2 }
 0x1c3   : > { %v675_v55 = vadd.f32 %v1113_v27, %v674_v54 }
 0x1c5   : > { %725 = vst.msk [vmem:[%s1118_s29 + $0xa0] sm:$0xff] %vm704_vm1, %v675_v55 }
 0x1ca   : > { %v676_v56 = vpop.f32.mrf.mxu2 }
 0x1cb   : > { %v677_v57 = vadd.f32 %v1113_v27, %v676_v56 }
 0x1cd   : > { %726 = vst.msk [vmem:[%s1118_s29 + $0xa8] sm:$0xff] %vm704_vm1, %v677_v57 }
 0x1d2   : > { %v679_v58 = vpop.f32.mrf.mxu2 }
 0x1d3   : > { %v680_v59 = vadd.f32 %v1113_v27, %v679_v58 }
 0x1d5   : > { %727 = vst.msk [vmem:[%s1118_s29 + $0xb0] sm:$0xff] %vm704_vm1, %v680_v59 }
 0x1da   : > { %v681_v60 = vpop.f32.mrf.mxu2 }
 0x1db   : > { %v682_v61 = vadd.f32 %v1113_v27, %v681_v60 }
 0x1dd   : > { %728 = vst.msk [vmem:[%s1118_s29 + $0xb8] sm:$0xff] %vm704_vm1, %v682_v61 }
 0x1e2   : > { %v684_v62 = vpop.f32.mrf.mxu2 }
 0x1e3   : > { %v685_v63 = vadd.f32 %v1113_v27, %v684_v62 }
 0x1e5   : > { %729 = vst.msk [vmem:[%s1118_s29 + $0xc0] sm:$0xff] %vm704_vm1, %v685_v63 }
 0x1ea   : > { %v686_v0 = vpop.f32.mrf.mxu2 }
 0x1eb   : > { %v687_v1 = vadd.f32 %v1113_v27, %v686_v0 }
 0x1ed   : > { %730 = vst.msk [vmem:[%s1118_s29 + $0xc8] sm:$0xff] %vm704_vm1, %v687_v1 }
 0x1f2   : > { %v689_v2 = vpop.f32.mrf.mxu2 }
 0x1f3   : > { %v690_v3 = vadd.f32 %v1113_v27, %v689_v2 }
 0x1f5   : > { %731 = vst.msk [vmem:[%s1118_s29 + $0xd0] sm:$0xff] %vm704_vm1, %v690_v3 }
 0x1fa   : > { %v691_v4 = vpop.f32.mrf.mxu2 }
 0x1fb   : > { %v692_v5 = vadd.f32 %v1113_v27, %v691_v4 }
 0x1fd   : > { %732 = vst.msk [vmem:[%s1118_s29 + $0xd8] sm:$0xff] %vm704_vm1, %v692_v5 }
 0x202   : > { %v694_v6 = vpop.f32.mrf.mxu2 }
 0x203   : > { %v695_v7 = vadd.f32 %v1113_v27, %v694_v6 }
 0x205   : > { %733 = vst.msk [vmem:[%s1118_s29 + $0xe0] sm:$0xff] %vm704_vm1, %v695_v7 }
 0x20a   : > { %v696_v8 = vpop.f32.mrf.mxu2 }
 0x20b   : > { %v697_v9 = vadd.f32 %v1113_v27, %v696_v8 }
 0x20d   : > { %734 = vst.msk [vmem:[%s1118_s29 + $0xe8] sm:$0xff] %vm704_vm1, %v697_v9 }
 0x212   : > { %v699_v10 = vpop.f32.mrf.mxu2 }
 0x213   : > { %v700_v11 = vadd.f32 %v1113_v27, %v699_v10 }
 0x215   : > { %735 = vst.msk [vmem:[%s1118_s29 + $0xf0] sm:$0xff] %vm704_vm1, %v700_v11 }
 0x21a   : > { %v701_v12 = vpop.f32.mrf.mxu2 }
 0x21b   : > { %v702_v13 = vadd.f32 %v1113_v27, %v701_v12 }
 0x21d   : > { %736 = vst.msk [vmem:[%s1118_s29 + $0xf8] sm:$0xff] %vm704_vm1, %v702_v13 }
 0x21e PF: > { %s15_s18 = sadd.s32 1, %s976_s18  }
 0x21f   : > { %p12_p4 = scmp.ge.s32.totalorder %s15_s18, 4  }
 0x221   :  { %14 = sbr.rel (!%p12_p4) target bundleno = 1 (0x1), region = 70 }

</bundles_post_ra>
